<compile_context>
chip_gen: v7x
topology: tpu7x:2x2x1
jax: 0.10.0
libtpu: 0.0.40
codegen_flags: <defaults>
</compile_context>

<pallas_src>
import jax
import jax.numpy as jnp
from jax.experimental import pallas as pl
from jax.experimental.pallas import tpu as pltpu

HIDDEN_SIZES = (64, 32)   # matches the PyTorch module
LANE = 128                # vreg lane width -> padded hidden width
W3T_ROWS = 16             # sublane padding for transposed output weights (bf16 tile)
TB_MAX = 4096             # batch rows per grid step (multiple of 256, VMEM-safe on v7x)


def _round_up(n, m):
    return ((n + m - 1) // m) * m


def _choose_tiling(batch):
    """Pick (tile_rows, padded_batch).  At least 2 tiles when the 256-aligned
    batch allows it (v7x megacore), tile capped at TB_MAX, tile a multiple of
    256 for MXU/lane alignment."""
    b_pad_min = _round_up(batch, 256)
    if b_pad_min >= 2 * 256:
        num_tiles = max(2, -(-b_pad_min // TB_MAX))          # ceil div, >= 2
        tb = min(TB_MAX, _round_up(-(-b_pad_min // num_tiles), 256))
    else:
        tb = b_pad_min
    b_pad = _round_up(batch, tb)
    return tb, b_pad


def _mlp_kernel(x_ref, w1_ref, b1_ref, w2_ref, b2_ref, w3t_ref, b3_ref, o_ref):
    f32, bf16 = jnp.float32, jnp.bfloat16
    # Cast x f32 -> bf16 on the VPU here (no extra HBM pass in the wrapper).
    x = x_ref[...].astype(bf16)
    # Layer 1: (TB, F)bf16 @ (F, 128)bf16 -> (TB, 128)f32, bias + ReLU.
    h1 = jnp.dot(x, w1_ref[...], preferred_element_type=f32)
    h1 = jnp.maximum(h1 + b1_ref[...], 0.0)
    # Layer 2: (TB, 128) @ (128, 128) -> (TB, 128), bias + ReLU.
    h2 = jnp.dot(h1.astype(bf16), w2_ref[...], preferred_element_type=f32)
    h2 = jnp.maximum(h2 + b2_ref[...], 0.0)
    # Output layer, computed transposed so the stored block is lane-dense:
    #   (W3T_ROWS, 128) @ (TB, 128)^T -> (W3T_ROWS, TB); only row 0 is real
    #   (rows 1.. of w3t are zero padding).
    out_t = jax.lax.dot_general(
        w3t_ref[...], h2.astype(bf16),
        dimension_numbers=(((1,), (1,)), ((), ())),
        preferred_element_type=f32)
    # b3 is a scalar held in SMEM.
    o_ref[...] = (out_t[0:1, :] + b3_ref[0]).astype(o_ref.dtype)


def prepare_params(params, input_size):
    """One-time (init-time) prep: zero-pad hidden dims to 128 lanes, transpose
    the output layer, cast MXU operands to bf16.  Biases stay f32.  Zero
    rows/cols contribute nothing and ReLU(0)=0, so this is mathematically
    identical to the original layers.  Call this OUTSIDE the hot path."""
    h1, h2 = HIDDEN_SIZES
    f32, bf16 = jnp.float32, jnp.bfloat16
    w1 = jnp.zeros((input_size, LANE), f32).at[:, :h1].set(params["w1"])
    b1 = jnp.zeros((1, LANE), f32).at[:, :h1].set(params["b1"])
    w2 = jnp.zeros((LANE, LANE), f32).at[:h1, :h2].set(params["w2"])
    b2 = jnp.zeros((1, LANE), f32).at[:, :h2].set(params["b2"])
    w3t = jnp.zeros((W3T_ROWS, LANE), f32).at[0, :h2].set(params["w3"][:, 0])
    b3 = params["b3"].reshape(1).astype(f32)        # SMEM scalar
    return dict(w1=w1.astype(bf16), b1=b1, w2=w2.astype(bf16), b2=b2,
                w3t=w3t.astype(bf16), b3=b3)


@jax.jit
def regression_model_forward(x, prepared):
    """Fused 3-layer MLP forward pass.
    x: (B, F) f32, prepared: output of prepare_params(). Returns (B, 1) f32."""
    B, F = x.shape
    w1, b1, w2, b2, w3t, b3 = (prepared["w1"], prepared["b1"], prepared["w2"],
                               prepared["b2"], prepared["w3t"], prepared["b3"])

    tb, b_pad = _choose_tiling(B)
    num_tiles = b_pad // tb

    # Only materialize a padded copy when the batch is ragged w.r.t. the tile;
    # padded rows produce garbage-free (zero-input) outputs that are sliced off.
    x_in = x if b_pad == B else jnp.pad(x, ((0, b_pad - B), (0, 0)))

    flops = 2 * b_pad * (F * LANE + LANE * LANE + LANE * W3T_ROWS)
    bytes_accessed = (
        b_pad * F * 4                                   # x f32 read (dominant)
        + (w1.size + w2.size + w3t.size) * 2            # bf16 weights
        + (b1.size + b2.size + b3.size) * 4             # f32 biases
        + b_pad * 4)                                    # f32 output write

    out_t = pl.pallas_call(
        _mlp_kernel,
        out_shape=jax.ShapeDtypeStruct((1, b_pad), jnp.float32),
        grid=(num_tiles,),
        in_specs=[
            pl.BlockSpec((tb, F), lambda i: (i, 0)),        # x: streamed per tile
            pl.BlockSpec(w1.shape, lambda i: (0, 0)),       # weights/biases resident
            pl.BlockSpec(b1.shape, lambda i: (0, 0)),
            pl.BlockSpec(w2.shape, lambda i: (0, 0)),
            pl.BlockSpec(b2.shape, lambda i: (0, 0)),
            pl.BlockSpec(w3t.shape, lambda i: (0, 0)),
            pl.BlockSpec(memory_space=pltpu.MemorySpace.SMEM),  # b3 scalar
        ],
        # Lane-dense (1, TB) output slab per step.
        out_specs=pl.BlockSpec((1, tb), lambda i: (0, i)),
        compiler_params=pltpu.CompilerParams(
            dimension_semantics=("parallel",)),
        cost_estimate=pl.CostEstimate(
            flops=flops, transcendentals=0, bytes_accessed=bytes_accessed),
    )(x_in, w1, b1, w2, b2, w3t, b3)

    # (1, b_pad) row-major == padded batch order; drop padding rows.
    return out_t.reshape(b_pad, 1)[:B]


def init_params(key, input_size, hidden_sizes=HIDDEN_SIZES):
    """Deterministic PyTorch-style (uniform +/- 1/sqrt(fan_in)) initialization.
    Weights stored pre-transposed as (in, out); biases as (1, out)."""
    dims = [input_size] + list(hidden_sizes) + [1]
    params = {}
    for i in range(len(dims) - 1):
        fan_in, fan_out = dims[i], dims[i + 1]
        key, kw, kb = jax.random.split(key, 3)
        bound = 1.0 / jnp.sqrt(jnp.float32(fan_in))
        params[f"w{i+1}"] = jax.random.uniform(
            kw, (fan_in, fan_out), jnp.float32, -bound, bound)
        params[f"b{i+1}"] = jax.random.uniform(
            kb, (1, fan_out), jnp.float32, -bound, bound)
    return params


def reference_forward(x, params):
    """Pure-JAX reference mirroring the kernel numerics (bf16 MXU operands,
    f32 accumulation and biases)."""
    bf16, f32 = jnp.bfloat16, jnp.float32
    h = jnp.dot(x.astype(bf16), params["w1"].astype(bf16), preferred_element_type=f32)
    h = jnp.maximum(h + params["b1"], 0.0)
    h = jnp.dot(h.astype(bf16), params["w2"].astype(bf16), preferred_element_type=f32)
    h = jnp.maximum(h + params["b2"], 0.0)
    return jnp.dot(h.astype(bf16), params["w3"].astype(bf16),
                   preferred_element_type=f32) + params["b3"]


if __name__ == "__main__":
    key = jax.random.PRNGKey(0)
    key_x, key_p = jax.random.split(key)

    batch = 8
    input_size = 16   # stands in for X.shape[1] (original + PCA features)

    x = jax.random.normal(key_x, (batch, input_size), dtype=jnp.float32)
    params = init_params(key_p, input_size)

    # Parameter prep happens ONCE here, outside the jitted forward.
    prepared = prepare_params(params, input_size)

    y = regression_model_forward(x, prepared)
    jax.block_until_ready(y)

    y_ref = reference_forward(x, params)
    assert y.shape == (batch, 1)
    assert jnp.allclose(y, y_ref, atol=5e-3, rtol=5e-3), "mismatch vs reference"

    print("KERNEL_OK")
</pallas_src>

<mosaic_0001>
module attributes {stable_mosaic.version = 11 : i64} {
  func.func @_mlp_kernel(%arg0: i32, %arg1: memref<256x16xf32, #tpu.memory_space<vmem>>, %arg2: memref<16x128xbf16, #tpu.memory_space<vmem>>, %arg3: memref<1x128xf32, #tpu.memory_space<vmem>>, %arg4: memref<128x128xbf16, #tpu.memory_space<vmem>>, %arg5: memref<1x128xf32, #tpu.memory_space<vmem>>, %arg6: memref<16x128xbf16, #tpu.memory_space<vmem>>, %arg7: memref<1xf32, #tpu.memory_space<smem>>, %arg8: memref<1x256xf32, #tpu.memory_space<vmem>>) attributes {dimension_semantics = [#tpu.dimension_semantics<parallel>], iteration_bounds = array<i64: 1>, scalar_prefetch = 0 : i64, scratch_operands = 0 : i64, tpu.core_type = #tpu.core_type<tc>, window_params = [{transform_indices = @transform_0, window_bounds = array<i64: 256, 16>}, {pipeline_mode = #tpu.pipeline_mode<synchronous>, transform_indices = @transform_1, window_bounds = array<i64: 16, 128>}, {pipeline_mode = #tpu.pipeline_mode<synchronous>, transform_indices = @transform_2, window_bounds = array<i64: 1, 128>}, {pipeline_mode = #tpu.pipeline_mode<synchronous>, transform_indices = @transform_3, window_bounds = array<i64: 128, 128>}, {pipeline_mode = #tpu.pipeline_mode<synchronous>, transform_indices = @transform_4, window_bounds = array<i64: 1, 128>}, {pipeline_mode = #tpu.pipeline_mode<synchronous>, transform_indices = @transform_5, window_bounds = array<i64: 16, 128>}, {transform_indices = @transform_6, window_bounds = array<i64: 1>}, {transform_indices = @transform_7, window_bounds = array<i64: 1, 256>}]} {
    %c0 = arith.constant 0 : index
    %c0_0 = arith.constant 0 : index
    %0 = vector.load %arg1[%c0, %c0_0] : memref<256x16xf32, #tpu.memory_space<vmem>>, vector<256x16xf32>
    %1 = arith.truncf %0 : vector<256x16xf32> to vector<256x16xbf16>
    %c0_1 = arith.constant 0 : index
    %c0_2 = arith.constant 0 : index
    %2 = vector.load %arg2[%c0_1, %c0_2] : memref<16x128xbf16, #tpu.memory_space<vmem>>, vector<16x128xbf16>
    %cst = arith.constant dense<0.000000e+00> : vector<256x128xf32>
    %3 = tpu.matmul %1, %2, %cst {dimension_numbers = #tpu.dot_dimension_numbers<[1], [0], [0], [1], [0, 0, 1, 1], [], []>} : vector<256x16xbf16>, vector<16x128xbf16>, vector<256x128xf32> -> vector<256x128xf32>
    %c0_3 = arith.constant 0 : index
    %c0_4 = arith.constant 0 : index
    %4 = vector.load %arg3[%c0_3, %c0_4] : memref<1x128xf32, #tpu.memory_space<vmem>>, vector<1x128xf32>
    %5 = vector.broadcast %4 : vector<1x128xf32> to vector<256x128xf32>
    %6 = arith.addf %3, %5 : vector<256x128xf32>
    %cst_5 = arith.constant 0.000000e+00 : f32
    %7 = vector.broadcast %cst_5 : f32 to vector<256x128xf32>
    %8 = arith.maximumf %6, %7 : vector<256x128xf32>
    %9 = arith.truncf %8 : vector<256x128xf32> to vector<256x128xbf16>
    %c0_6 = arith.constant 0 : index
    %c0_7 = arith.constant 0 : index
    %10 = vector.load %arg4[%c0_6, %c0_7] : memref<128x128xbf16, #tpu.memory_space<vmem>>, vector<128x128xbf16>
    %cst_8 = arith.constant dense<0.000000e+00> : vector<256x128xf32>
    %11 = tpu.matmul %9, %10, %cst_8 {dimension_numbers = #tpu.dot_dimension_numbers<[1], [0], [0], [1], [0, 0, 1, 1], [], []>} : vector<256x128xbf16>, vector<128x128xbf16>, vector<256x128xf32> -> vector<256x128xf32>
    %c0_9 = arith.constant 0 : index
    %c0_10 = arith.constant 0 : index
    %12 = vector.load %arg5[%c0_9, %c0_10] : memref<1x128xf32, #tpu.memory_space<vmem>>, vector<1x128xf32>
    %13 = vector.broadcast %12 : vector<1x128xf32> to vector<256x128xf32>
    %14 = arith.addf %11, %13 : vector<256x128xf32>
    %cst_11 = arith.constant 0.000000e+00 : f32
    %15 = vector.broadcast %cst_11 : f32 to vector<256x128xf32>
    %16 = arith.maximumf %14, %15 : vector<256x128xf32>
    %c0_12 = arith.constant 0 : index
    %c0_13 = arith.constant 0 : index
    %17 = vector.load %arg6[%c0_12, %c0_13] : memref<16x128xbf16, #tpu.memory_space<vmem>>, vector<16x128xbf16>
    %18 = arith.truncf %16 : vector<256x128xf32> to vector<256x128xbf16>
    %cst_14 = arith.constant dense<0.000000e+00> : vector<16x256xf32>
    %19 = tpu.matmul %17, %18, %cst_14 {dimension_numbers = #tpu.dot_dimension_numbers<[1], [1], [0], [0], [0, 0, 1, 0], [], []>} : vector<16x128xbf16>, vector<256x128xbf16>, vector<16x256xf32> -> vector<16x256xf32>
    %20 = vector.extract_strided_slice %19 {offsets = [0, 0], sizes = [1, 256], strides = [1, 1]} : vector<16x256xf32> to vector<1x256xf32>
    %c0_15 = arith.constant 0 : index
    %21 = memref.load %arg7[%c0_15] : memref<1xf32, #tpu.memory_space<smem>>
    %22 = vector.broadcast %21 : f32 to vector<1x256xf32>
    %23 = arith.addf %20, %22 : vector<1x256xf32>
    %c0_16 = arith.constant 0 : index
    %c0_17 = arith.constant 0 : index
    %24 = vector.load %arg8[%c0_16, %c0_17] : memref<1x256xf32, #tpu.memory_space<vmem>>, vector<1x256xf32>
    tpu.vector_store %arg8[%c0_16, %c0_17], %23 {strides = array<i32>} : memref<1x256xf32, #tpu.memory_space<vmem>>, vector<1x256xf32>,
    return
  }
  func.func @transform_0(%arg0: i32) -> (i32, i32) {
    %c0_i32 = arith.constant 0 : i32
    %c0_i32_0 = arith.constant 0 : i32
    return %arg0, %c0_i32 : i32, i32
  }
  func.func @transform_1(%arg0: i32) -> (i32, i32) {
    %c0_i32 = arith.constant 0 : i32
    %c0_i32_0 = arith.constant 0 : i32
    %c0_i32_1 = arith.constant 0 : i32
    return %c0_i32, %c0_i32_0 : i32, i32
  }
  func.func @transform_2(%arg0: i32) -> (i32, i32) {
    %c0_i32 = arith.constant 0 : i32
    %c0_i32_0 = arith.constant 0 : i32
    %c0_i32_1 = arith.constant 0 : i32
    return %c0_i32, %c0_i32_0 : i32, i32
  }
  func.func @transform_3(%arg0: i32) -> (i32, i32) {
    %c0_i32 = arith.constant 0 : i32
    %c0_i32_0 = arith.constant 0 : i32
    %c0_i32_1 = arith.constant 0 : i32
    return %c0_i32, %c0_i32_0 : i32, i32
  }
  func.func @transform_4(%arg0: i32) -> (i32, i32) {
    %c0_i32 = arith.constant 0 : i32
    %c0_i32_0 = arith.constant 0 : i32
    %c0_i32_1 = arith.constant 0 : i32
    return %c0_i32, %c0_i32_0 : i32, i32
  }
  func.func @transform_5(%arg0: i32) -> (i32, i32) {
    %c0_i32 = arith.constant 0 : i32
    %c0_i32_0 = arith.constant 0 : i32
    %c0_i32_1 = arith.constant 0 : i32
    return %c0_i32, %c0_i32_0 : i32, i32
  }
  func.func @transform_6(%arg0: i32) -> i32 {
    %c0_i32 = arith.constant 0 : i32
    %c0_i32_0 = arith.constant 0 : i32
    return %c0_i32 : i32
  }
  func.func @transform_7(%arg0: i32) -> (i32, i32) {
    %c0_i32 = arith.constant 0 : i32
    %c0_i32_0 = arith.constant 0 : i32
    return %c0_i32, %arg0 : i32, i32
  }
}

</mosaic_0001>

<bundles_post_ra>
// kernel: regression_model_forward.1
= control target key start
LH: loop header
LB: loop body
LE: loop exit
PB: predicated region body
PF: predicated region fallthrough
CT: control target
= control target key end

     0   :  { %vm91_vm0 = vcmask 130048   ;;  %s1180_s1 = inlined_call_operand.vmem [shape: bf16[16,128], index: 1, kind: input, shape index: {}]   ;;  %s1181_s0 = inlined_call_operand.vmem [shape: f32[256,16], index: 0, kind: input, shape index: {}]   ;;  %s1182_s3 = inlined_call_operand.vmem [shape: bf16[128,128], index: 3, kind: input, shape index: {}]   ;;  %s1183_s2 = inlined_call_operand.vmem [shape: f32[1,128], index: 2, kind: input, shape index: {}]   ;;  %s1184_s5 = inlined_call_operand.vmem [shape: bf16[16,128], index: 5, kind: input, shape index: {}]   ;;  %s1185_s4 = inlined_call_operand.vmem [shape: f32[1,128], index: 4, kind: input, shape index: {}]   ;;  %s1186_s6 = inlined_call_operand.<no memory space> [shape: f32[1], index: 6, kind: input, shape index: {}]   ;;  %s1187_s7 = inlined_call_operand.vmem [shape: f32[1,256], index: 7, kind: output, shape index: {}]  }
   0x1   :  { %v879_v0 = vld [vmem:[%s1180_s1] sm:$0xff]   ;;  %v29_v2 = vld [vmem:[%s1181_s0 + $0x8] sm:$0xff]  ;;  %v30_v3 = vld [vmem:[%s1181_s0 + $0x10] sm:$0xff] }
   0x2   :  { %v28_v1 = vld [vmem:[%s1181_s0] sm:$0xff]  ;;  %796 = vmatprep.subr.bf16.mxu0 %v879_v0  ;;  %v31_v5 = vld [vmem:[%s1181_s0 + $0x18] sm:$0xff]  ;;  %v33_v7 = vld [vmem:[%s1181_s0 + $0x28] sm:$0xff] }
   0x3   :  { %v60_v4 = vpack.c.bf16 %v29_v2, %v28_v1  ;;  %v32_v6 = vld [vmem:[%s1181_s0 + $0x20] sm:$0xff]  ;;  %797 = vmatpush3.bf16.msra.mxu0 %v879_v0  ;;  %v61_v8 = vpack.c.bf16 %v31_v5, %v30_v3  ;;  %v34_v10 = vld [vmem:[%s1181_s0 + $0x30] sm:$0xff]  ;;  %v35_v11 = vld [vmem:[%s1181_s0 + $0x38] sm:$0xff] }
   0x4   :  { %v62_v9 = vpack.c.bf16 %v33_v7, %v32_v6  ;;  %v36_v12 = vld [vmem:[%s1181_s0 + $0x40] sm:$0xff]  ;;  %v37_v13 = vld [vmem:[%s1181_s0 + $0x48] sm:$0xff]  ;;  %v63_v14 = vpack.c.bf16 %v35_v11, %v34_v10  ;;  %v38_v17 = vld [vmem:[%s1181_s0 + $0x50] sm:$0xff] }
   0x5   :  { %798 = vmatprep.mubr.msk.bf16.mxu0 %vm91_vm0, %v60_v4  ;;  %v64_v15 = vpack.c.bf16 %v37_v13, %v36_v12  ;;  %v880_v16 = vld [vmem:[%s1182_s3] sm:$0xff]   ;;  %v39_v18 = vld [vmem:[%s1181_s0 + $0x58] sm:$0xff]  ;;  %v881_v19 = vld [vmem:[%s1182_s3 + $0x8] sm:$0xff]  }
   0x6   :  { %799 = vmatmul.mubr.msk.bf16.vlgmr.msra.gmra.mrb[0].mxu0 %vm91_vm0, %v61_v8  ;;  %v40_v20 = vld [vmem:[%s1181_s0 + $0x60] sm:$0xff]  ;;  %830 = vmatprep.subr.bf16.mxu1 %v880_v16  ;;  %v41_v21 = vld [vmem:[%s1181_s0 + $0x68] sm:$0xff]  ;;  %v882_v22 = vld [vmem:[%s1182_s3 + $0x10] sm:$0xff]   ;;  %v65_v23 = vpack.c.bf16 %v39_v18, %v38_v17 }
   0x7   :  { %802 = vmatprep.mubr.msk.bf16.mxu0 %vm91_vm0, %v62_v9  ;;  %831 = vmatpush3.bf16.msra.mxu1 %v880_v16  ;;  %v66_v24 = vpack.c.bf16 %v41_v21, %v40_v20  ;;  %v883_v25 = vld [vmem:[%s1182_s3 + $0x18] sm:$0xff]   ;;  %v42_v26 = vld [vmem:[%s1181_s0 + $0x70] sm:$0xff]  ;;  %v44_v28 = vld [vmem:[%s1181_s0 + $0x80] sm:$0xff] }
   0x8   :  { %832 = vmatprep.subr.bf16.mxu1 %v881_v19  ;;  %v43_v27 = vld [vmem:[%s1181_s0 + $0x78] sm:$0xff]  ;;  %v45_v29 = vld [vmem:[%s1181_s0 + $0x88] sm:$0xff]  ;;  %v884_v30 = vld [vmem:[%s1182_s3 + $0x20] sm:$0xff]  }
   0x9   :  { %v67_v31 = vpack.c.bf16 %v43_v27, %v42_v26  ;;  %v68_v32 = vpack.c.bf16 %v45_v29, %v44_v28  ;;  %v885_v33 = vld [vmem:[%s1182_s3 + $0x28] sm:$0xff]   ;;  %v46_v34 = vld [vmem:[%s1181_s0 + $0x90] sm:$0xff]  ;;  %v47_v35 = vld [vmem:[%s1181_s0 + $0x98] sm:$0xff] }
   0xa   :  { %v48_v36 = vld [vmem:[%s1181_s0 + $0xa0] sm:$0xff]  ;;  %v49_v37 = vld [vmem:[%s1181_s0 + $0xa8] sm:$0xff]  ;;  %v69_v38 = vpack.c.bf16 %v47_v35, %v46_v34  ;;  %v50_v40 = vld [vmem:[%s1181_s0 + $0xb0] sm:$0xff] }
   0xb   :  { %833 = vmatpush3.bf16.msra.mxu1 %v881_v19  ;;  %v70_v39 = vpack.c.bf16 %v49_v37, %v48_v36  ;;  %v51_v41 = vld [vmem:[%s1181_s0 + $0xb8] sm:$0xff]  ;;  %v52_v42 = vld [vmem:[%s1181_s0 + $0xc0] sm:$0xff]  ;;  %v53_v43 = vld [vmem:[%s1181_s0 + $0xc8] sm:$0xff] }
   0xc   :  { %834 = vmatprep.subr.bf16.mxu1 %v882_v22  ;;  %v71_v44 = vpack.c.bf16 %v51_v41, %v50_v40  ;;  %v72_v45 = vpack.c.bf16 %v53_v43, %v52_v42  ;;  %v54_v46 = vld [vmem:[%s1181_s0 + $0xd0] sm:$0xff]  ;;  %v55_v47 = vld [vmem:[%s1181_s0 + $0xd8] sm:$0xff]  ;;  %v56_v48 = vld [vmem:[%s1181_s0 + $0xe0] sm:$0xff] }
   0xd   :  { %v57_v49 = vld [vmem:[%s1181_s0 + $0xe8] sm:$0xff]  ;;  %v73_v50 = vpack.c.bf16 %v55_v47, %v54_v46  ;;  %v58_v52 = vld [vmem:[%s1181_s0 + $0xf0] sm:$0xff]  ;;  %v59_v53 = vld [vmem:[%s1181_s0 + $0xf8] sm:$0xff] }
   0xe   :  { %803 = vmatmul.mubr.msk.bf16.gmra.mrb[4].mxu0 %vm91_vm0, %v63_v14  ;;  %v74_v51 = vpack.c.bf16 %v57_v49, %v56_v48  ;;  %v75_v54 = vpack.c.bf16 %v59_v53, %v58_v52  ;;  %v886_v55 = vld [vmem:[%s1182_s3 + $0x30] sm:$0xff]   ;;  %v887_v56 = vld [vmem:[%s1182_s3 + $0x38] sm:$0xff]   ;;  %v1072_v57 = vld [vmem:[%s1183_s2] ss:$0 sm:$0xff] }
   0xf   :  { %806 = vmatprep.mubr.msk.bf16.mxu0 %vm91_vm0, %v64_v15  ;;  %835 = vmatpush3.bf16.msra.mxu1 %v882_v22 }
  0x10   :  { %836 = vmatprep.subr.bf16.mxu1 %v883_v25 }
  0x13   :  { %837 = vmatpush3.bf16.msra.mxu1 %v883_v25 }
  0x14   :  { %838 = vmatprep.subr.bf16.mxu1 %v884_v30 }
  0x16   :  { %807 = vmatmul.mubr.msk.bf16.gmra.mrb[8].mxu0 %vm91_vm0, %v65_v23 }
  0x17   :  { %810 = vmatprep.mubr.msk.bf16.mxu0 %vm91_vm0, %v66_v24  ;;  %839 = vmatpush3.bf16.msra.mxu1 %v884_v30 }
  0x18   :  { %840 = vmatprep.subr.bf16.mxu1 %v885_v33 }
  0x1b   :  { %841 = vmatpush3.bf16.msra.mxu1 %v885_v33 }
  0x1c   :  { %842 = vmatprep.subr.bf16.mxu1 %v886_v55 }
  0x1e   :  { %811 = vmatmul.mubr.msk.bf16.gmra.mrb[12].mxu0 %vm91_vm0, %v67_v31 }
  0x1f   :  { %814 = vmatprep.mubr.msk.bf16.mxu0 %vm91_vm0, %v68_v32  ;;  %843 = vmatpush3.bf16.msra.mxu1 %v886_v55 }
  0x20   :  { %844 = vmatprep.subr.bf16.mxu1 %v887_v56 }
  0x23   :  { %845 = vmatpush3.bf16.msra.mxu1 %v887_v56 }
  0x26   :  { %815 = vmatmul.mubr.msk.bf16.gmra.mrb[16].mxu0 %vm91_vm0, %v69_v38 }
  0x27   :  { %818 = vmatprep.mubr.msk.bf16.mxu0 %vm91_vm0, %v70_v39 }
  0x2e   :  { %819 = vmatmul.mubr.msk.bf16.gmra.mrb[20].mxu0 %vm91_vm0, %v71_v44 }
  0x2f   :  { %822 = vmatprep.mubr.msk.bf16.mxu0 %vm91_vm0, %v72_v45 }
  0x36   :  { %823 = vmatmul.mubr.msk.bf16.gmra.mrb[24].mxu0 %vm91_vm0, %v73_v50 }
  0x37   :  { %826 = vmatprep.mubr.msk.bf16.mxu0 %vm91_vm0, %v74_v51 }
  0x3e   :  { %827 = vmatmul.mubr.msk.bf16.gmra.mrb[28].mxu0 %vm91_vm0, %v75_v54 }
  0xd9   :  { %v800_v58 = vpop.f32.mrb[0].mxu0 }
  0xda   :  { %v183_v59 = vadd.f32 %v800_v58, %v1072_v57  ;;  %v174_v60 = vpop.f32.mrb[1].mxu0 }
  0xdb   :  { %v175_v61 = vadd.f32 %v1072_v57, %v174_v60  ;;  %v801_v62 = vpop.f32.mrb[2].mxu0 }
  0xdc   :  { %v186_v63 = vadd.f32 %v801_v62, %v1072_v57  ;;  %v177_v0 = vpop.f32.mrb[3].mxu0  ;;  %v303_v2 = vmax.f32 %v183_v59, 0.0 }
  0xdd   :  { %v178_v1 = vadd.f32 %v1072_v57, %v177_v0  ;;  %v301_v4 = vmax.f32 %v175_v61, 0.0 }
  0xde   :  { %v304_v3 = vmax.f32 %v186_v63, 0.0 }
  0xdf   :  { %v302_v5 = vmax.f32 %v178_v1, 0.0 }
  0xe0   :  { %v334_v6 = vpack.c.bf16 %v304_v3, %v303_v2 }
  0xe1   :  { %v804_v7 = vpop.f32.mrb[4].mxu0  ;;  %v333_v8 = vpack.c.bf16 %v302_v5, %v301_v4 }
  0xe2   :  { %v199_v9 = vadd.f32 %v804_v7, %v1072_v57  ;;  %v190_v10 = vpop.f32.mrb[5].mxu0 }
  0xe3   :  { %v191_v11 = vadd.f32 %v1072_v57, %v190_v10  ;;  %v805_v12 = vpop.f32.mrb[6].mxu0  ;;  %846 = vmatprep.mubr.bf16.mxu1 %v333_v8 }
  0xe4   :  { %v202_v13 = vadd.f32 %v805_v12, %v1072_v57  ;;  %v193_v14 = vpop.f32.mrb[7].mxu0  ;;  %847 = vmatmul.mubr.bf16.vlgmr.msra.gmra.mrb[0].mxu1 %v334_v6  ;;  %v307_v16 = vmax.f32 %v199_v9, 0.0 }
  0xe5   :  { %v194_v15 = vadd.f32 %v1072_v57, %v193_v14  ;;  %v305_v18 = vmax.f32 %v191_v11, 0.0 }
  0xe6   :  { %v308_v17 = vmax.f32 %v202_v13, 0.0 }
  0xe7   :  { %v306_v19 = vmax.f32 %v194_v15, 0.0 }
  0xe8   :  { %v336_v20 = vpack.c.bf16 %v308_v17, %v307_v16 }
  0xe9   :  { %v335_v21 = vpack.c.bf16 %v306_v19, %v305_v18  ;;  %v808_v22 = vpop.f32.mrb[8].mxu0 }
  0xea   :  { %v215_v23 = vadd.f32 %v808_v22, %v1072_v57  ;;  %v206_v24 = vpop.f32.mrb[9].mxu0 }
  0xeb   :  { %v207_v25 = vadd.f32 %v1072_v57, %v206_v24  ;;  %v809_v26 = vpop.f32.mrb[10].mxu0  ;;  %850 = vmatprep.mubr.bf16.mxu1 %v335_v21 }
  0xec   :  { %v218_v27 = vadd.f32 %v809_v26, %v1072_v57  ;;  %v209_v28 = vpop.f32.mrb[11].mxu0  ;;  %851 = vmatmul.mubr.bf16.gmra.mrb[4].mxu1 %v336_v20  ;;  %v311_v30 = vmax.f32 %v215_v23, 0.0 }
  0xed   :  { %v210_v29 = vadd.f32 %v1072_v57, %v209_v28  ;;  %v309_v32 = vmax.f32 %v207_v25, 0.0 }
  0xee   :  { %v312_v31 = vmax.f32 %v218_v27, 0.0 }
  0xef   :  { %v310_v33 = vmax.f32 %v210_v29, 0.0 }
  0xf0   :  { %v338_v34 = vpack.c.bf16 %v312_v31, %v311_v30 }
  0xf1   :  { %v337_v35 = vpack.c.bf16 %v310_v33, %v309_v32  ;;  %v812_v36 = vpop.f32.mrb[12].mxu0 }
  0xf2   :  { %v231_v37 = vadd.f32 %v812_v36, %v1072_v57  ;;  %v222_v38 = vpop.f32.mrb[13].mxu0 }
  0xf3   :  { %v223_v39 = vadd.f32 %v1072_v57, %v222_v38  ;;  %v813_v40 = vpop.f32.mrb[14].mxu0  ;;  %854 = vmatprep.mubr.bf16.mxu1 %v337_v35 }
  0xf4   :  { %v234_v41 = vadd.f32 %v813_v40, %v1072_v57  ;;  %v225_v42 = vpop.f32.mrb[15].mxu0  ;;  %855 = vmatmul.mubr.bf16.gmra.mrb[8].mxu1 %v338_v34  ;;  %v315_v44 = vmax.f32 %v231_v37, 0.0 }
  0xf5   :  { %v226_v43 = vadd.f32 %v1072_v57, %v225_v42  ;;  %v313_v46 = vmax.f32 %v223_v39, 0.0 }
  0xf6   :  { %v316_v45 = vmax.f32 %v234_v41, 0.0 }
  0xf7   :  { %v314_v47 = vmax.f32 %v226_v43, 0.0  ;;  %v1109_v43 = vld [vmem:[%s1184_s5] sm:$0xff]  }
  0xf8   :  { %v340_v48 = vpack.c.bf16 %v316_v45, %v315_v44  ;;  %794 = vmatprep.mubr.bf16.mxu0 %v1109_v43  ;;  %v1115_v44 = vld [vmem:[%s1185_s4] ss:$0 sm:$0xff] }
  0xf9   :  { %v339_v49 = vpack.c.bf16 %v314_v47, %v313_v46  ;;  %v816_v50 = vpop.f32.mrb[16].mxu0 }
  0xfa   :  { %v247_v51 = vadd.f32 %v816_v50, %v1072_v57  ;;  %v238_v52 = vpop.f32.mrb[17].mxu0 }
  0xfb   :  { %v239_v53 = vadd.f32 %v1072_v57, %v238_v52  ;;  %v817_v54 = vpop.f32.mrb[18].mxu0  ;;  %858 = vmatprep.mubr.bf16.mxu1 %v339_v49 }
  0xfc   :  { %v250_v55 = vadd.f32 %v817_v54, %v1072_v57  ;;  %v241_v56 = vpop.f32.mrb[19].mxu0  ;;  %859 = vmatmul.mubr.bf16.gmra.mrb[12].mxu1 %v340_v48  ;;  %v319_v59 = vmax.f32 %v247_v51, 0.0 }
  0xfd   :  { %v242_v58 = vadd.f32 %v1072_v57, %v241_v56  ;;  %v317_v61 = vmax.f32 %v239_v53, 0.0 }
  0xfe   :  { %v320_v60 = vmax.f32 %v250_v55, 0.0 }
  0xff   :  { %v318_v62 = vmax.f32 %v242_v58, 0.0 }
 0x100   :  { %v342_v63 = vpack.c.bf16 %v320_v60, %v319_v59 }
 0x101   :  { %v341_v0 = vpack.c.bf16 %v318_v62, %v317_v61  ;;  %v820_v1 = vpop.f32.mrb[20].mxu0 }
 0x102   :  { %v263_v2 = vadd.f32 %v820_v1, %v1072_v57  ;;  %v254_v3 = vpop.f32.mrb[21].mxu0 }
 0x103   :  { %v255_v4 = vadd.f32 %v1072_v57, %v254_v3  ;;  %862 = vmatprep.mubr.bf16.mxu1 %v341_v0  ;;  %v821_v5 = vpop.f32.mrb[22].mxu0 }
 0x104   :  { %v323_v6 = vmax.f32 %v263_v2, 0.0  ;;  %v266_v7 = vadd.f32 %v821_v5, %v1072_v57  ;;  %863 = vmatmul.mubr.bf16.gmra.mrb[16].mxu1 %v342_v63  ;;  %v257_v8 = vpop.f32.mrb[23].mxu0 }
 0x105   :  { %v321_v9 = vmax.f32 %v255_v4, 0.0  ;;  %v258_v10 = vadd.f32 %v1072_v57, %v257_v8 }
 0x106   :  { %v324_v11 = vmax.f32 %v266_v7, 0.0 }
 0x107   :  { %v322_v12 = vmax.f32 %v258_v10, 0.0 }
 0x108   :  { %v344_v13 = vpack.c.bf16 %v324_v11, %v323_v6 }
 0x109   :  { %v343_v14 = vpack.c.bf16 %v322_v12, %v321_v9  ;;  %v824_v15 = vpop.f32.mrb[24].mxu0 }
 0x10a   :  { %v279_v16 = vadd.f32 %v824_v15, %v1072_v57  ;;  %v270_v17 = vpop.f32.mrb[25].mxu0 }
 0x10b   :  { %866 = vmatprep.mubr.bf16.mxu1 %v343_v14  ;;  %v271_v18 = vadd.f32 %v1072_v57, %v270_v17  ;;  %v825_v19 = vpop.f32.mrb[26].mxu0 }
 0x10c   :  { %867 = vmatmul.mubr.bf16.gmra.mrb[20].mxu1 %v344_v13  ;;  %v327_v20 = vmax.f32 %v279_v16, 0.0  ;;  %v282_v21 = vadd.f32 %v825_v19, %v1072_v57  ;;  %v273_v22 = vpop.f32.mrb[27].mxu0 }
 0x10d   :  { %v325_v23 = vmax.f32 %v271_v18, 0.0  ;;  %v274_v24 = vadd.f32 %v1072_v57, %v273_v22 }
 0x10e   :  { %v328_v25 = vmax.f32 %v282_v21, 0.0 }
 0x10f   :  { %v326_v26 = vmax.f32 %v274_v24, 0.0 }
 0x110   :  { %v346_v27 = vpack.c.bf16 %v328_v25, %v327_v20 }
 0x111   :  { %v345_v28 = vpack.c.bf16 %v326_v26, %v325_v23  ;;  %v828_v29 = vpop.f32.mrb[28].mxu0 }
 0x112   :  { %v295_v30 = vadd.f32 %v828_v29, %v1072_v57  ;;  %v286_v31 = vpop.f32.mrb[29].mxu0 }
 0x113   :  { %870 = vmatprep.mubr.bf16.mxu1 %v345_v28  ;;  %v287_v32 = vadd.f32 %v1072_v57, %v286_v31  ;;  %v829_v33 = vpop.f32.mrb[30].mxu0 }
 0x114   :  { %871 = vmatmul.mubr.bf16.gmra.mrb[24].mxu1 %v346_v27  ;;  %v331_v34 = vmax.f32 %v295_v30, 0.0  ;;  %v298_v35 = vadd.f32 %v829_v33, %v1072_v57  ;;  %v289_v36 = vpop.f32.mrb[31].mxu0 }
 0x115   :  { %v329_v37 = vmax.f32 %v287_v32, 0.0  ;;  %v290_v38 = vadd.f32 %v1072_v57, %v289_v36 }
 0x116   :  { %v332_v39 = vmax.f32 %v298_v35, 0.0 }
 0x117   :  { %v330_v40 = vmax.f32 %v290_v38, 0.0 }
 0x118   :  { %v348_v41 = vpack.c.bf16 %v332_v39, %v331_v34 }
 0x119   :  { %v347_v42 = vpack.c.bf16 %v330_v40, %v329_v37 }
 0x11b   :  { %874 = vmatprep.mubr.bf16.mxu1 %v347_v42 }
 0x11c   :  { %875 = vmatmul.mubr.bf16.gmra.mrb[28].mxu1 %v348_v41 }
 0x1b7   :  { %v848_v45 = vpop.f32.mrb[0].mxu1 }
 0x1b8   :  { %v463_v57 = vadd.f32 %v848_v45, %v1115_v44  ;;  %v454_v46 = vpop.f32.mrb[1].mxu1 }
 0x1b9   :  { %v455_v47 = vadd.f32 %v1115_v44, %v454_v46  ;;  %v849_v48 = vpop.f32.mrb[2].mxu1 }
 0x1ba   :  { %v466_v49 = vadd.f32 %v849_v48, %v1115_v44  ;;  %v457_v50 = vpop.f32.mrb[3].mxu1  ;;  %v583_v52 = vmax.f32 %v463_v57, 0.0 }
 0x1bb   :  { %v458_v51 = vadd.f32 %v1115_v44, %v457_v50  ;;  %v581_v54 = vmax.f32 %v455_v47, 0.0 }
 0x1bc   :  { %v584_v53 = vmax.f32 %v466_v49, 0.0 }
 0x1bd   :  { %v582_v55 = vmax.f32 %v458_v51, 0.0 }
 0x1be   :  { %v1121_v56 = vpack.c.bf16 %v584_v53, %v583_v52 }
 0x1bf   :  { %v1123_v58 = vpack.c.bf16 %v582_v55, %v581_v54  ;;  %v852_v59 = vpop.f32.mrb[4].mxu1 }
 0x1c0   :  { %v479_v60 = vadd.f32 %v852_v59, %v1115_v44  ;;  %v470_v61 = vpop.f32.mrb[5].mxu1 }
 0x1c1   :  { %v471_v62 = vadd.f32 %v1115_v44, %v470_v61  ;;  %v853_v63 = vpop.f32.mrb[6].mxu1 }
 0x1c2   :  { %v482_v0 = vadd.f32 %v853_v63, %v1115_v44  ;;  %v473_v1 = vpop.f32.mrb[7].mxu1  ;;  %v587_v3 = vmax.f32 %v479_v60, 0.0 }
 0x1c3   :  { %v474_v2 = vadd.f32 %v1115_v44, %v473_v1  ;;  %v585_v5 = vmax.f32 %v471_v62, 0.0 }
 0x1c4   :  { %v588_v4 = vmax.f32 %v482_v0, 0.0 }
 0x1c5   :  { %v586_v6 = vmax.f32 %v474_v2, 0.0 }
 0x1c6   :  { %v1129_v7 = vpack.c.bf16 %v588_v4, %v587_v3 }
 0x1c7   :  { %v1131_v8 = vpack.c.bf16 %v586_v6, %v585_v5  ;;  %v856_v9 = vpop.f32.mrb[8].mxu1 }
 0x1c8   :  { %v495_v10 = vadd.f32 %v856_v9, %v1115_v44  ;;  %v486_v11 = vpop.f32.mrb[9].mxu1 }
 0x1c9   :  { %v487_v12 = vadd.f32 %v1115_v44, %v486_v11  ;;  %v857_v13 = vpop.f32.mrb[10].mxu1 }
 0x1ca   :  { %v498_v14 = vadd.f32 %v857_v13, %v1115_v44  ;;  %v489_v15 = vpop.f32.mrb[11].mxu1  ;;  %v591_v17 = vmax.f32 %v495_v10, 0.0 }
 0x1cb   :  { %v490_v16 = vadd.f32 %v1115_v44, %v489_v15  ;;  %v589_v19 = vmax.f32 %v487_v12, 0.0 }
 0x1cc   :  { %v592_v18 = vmax.f32 %v498_v14, 0.0 }
 0x1cd   :  { %v590_v20 = vmax.f32 %v490_v16, 0.0 }
 0x1ce   :  { %v1137_v21 = vpack.c.bf16 %v592_v18, %v591_v17 }
 0x1cf   :  { %v1139_v22 = vpack.c.bf16 %v590_v20, %v589_v19  ;;  %v860_v23 = vpop.f32.mrb[12].mxu1 }
 0x1d0   :  { %v511_v24 = vadd.f32 %v860_v23, %v1115_v44  ;;  %v502_v25 = vpop.f32.mrb[13].mxu1 }
 0x1d1   :  { %v503_v26 = vadd.f32 %v1115_v44, %v502_v25  ;;  %v861_v27 = vpop.f32.mrb[14].mxu1 }
 0x1d2   :  { %v514_v28 = vadd.f32 %v861_v27, %v1115_v44  ;;  %v505_v29 = vpop.f32.mrb[15].mxu1  ;;  %v595_v31 = vmax.f32 %v511_v24, 0.0 }
 0x1d3   :  { %v506_v30 = vadd.f32 %v1115_v44, %v505_v29  ;;  %v593_v33 = vmax.f32 %v503_v26, 0.0 }
 0x1d4   :  { %v596_v32 = vmax.f32 %v514_v28, 0.0 }
 0x1d5   :  { %v594_v34 = vmax.f32 %v506_v30, 0.0 }
 0x1d6   :  { %v1145_v35 = vpack.c.bf16 %v596_v32, %v595_v31 }
 0x1d7   :  { %v1147_v36 = vpack.c.bf16 %v594_v34, %v593_v33  ;;  %v864_v37 = vpop.f32.mrb[16].mxu1 }
 0x1d8   :  { %v527_v38 = vadd.f32 %v864_v37, %v1115_v44  ;;  %v518_v39 = vpop.f32.mrb[17].mxu1  ;;  %v688_v37 = vlaneseq }
 0x1d9   :  { %v519_v40 = vadd.f32 %v1115_v44, %v518_v39  ;;  %v865_v41 = vpop.f32.mrb[18].mxu1 }
 0x1da   :  { %v530_v42 = vadd.f32 %v865_v41, %v1115_v44  ;;  %v521_v45 = vpop.f32.mrb[19].mxu1  ;;  %v599_v46 = vmax.f32 %v527_v38, 0.0  ;;  %vm702_vm1 = vcmp.lt.s32.totalorder %v688_v37, 256 }
 0x1db   :  { %v522_v57 = vadd.f32 %v1115_v44, %v521_v45  ;;  %v597_v48 = vmax.f32 %v519_v40, 0.0 }
 0x1dc   :  { %v600_v47 = vmax.f32 %v530_v42, 0.0 }
 0x1dd   :  { %v598_v49 = vmax.f32 %v522_v57, 0.0 }
 0x1de   :  { %v624_v50 = vpack.c.bf16 %v600_v47, %v599_v46 }
 0x1df   :  { %v623_v51 = vpack.c.bf16 %v598_v49, %v597_v48  ;;  %v868_v52 = vpop.f32.mrb[20].mxu1 }
 0x1e0   :  { %v543_v53 = vadd.f32 %v868_v52, %v1115_v44  ;;  %v534_v54 = vpop.f32.mrb[21].mxu1 }
 0x1e1   :  { %v535_v55 = vadd.f32 %v1115_v44, %v534_v54  ;;  %778 = vmatprep.subr.bf16.mxu0 %v623_v51  ;;  %v869_v59 = vpop.f32.mrb[22].mxu1 }
 0x1e2   :  { %v603_v60 = vmax.f32 %v543_v53, 0.0  ;;  %v546_v61 = vadd.f32 %v869_v59, %v1115_v44  ;;  %779 = vmatpush3.bf16.xpose.msra.mxu0 %v1123_v58  ;;  %v537_v62 = vpop.f32.mrb[23].mxu1 }
 0x1e3   :  { %v601_v63 = vmax.f32 %v535_v55, 0.0  ;;  %v538_v0 = vadd.f32 %v1115_v44, %v537_v62  ;;  %780 = vmatprep.subr.bf16.mxu0 %v624_v50 }
 0x1e4   :  { %v604_v1 = vmax.f32 %v546_v61, 0.0 }
 0x1e5   :  { %v602_v2 = vmax.f32 %v538_v0, 0.0 }
 0x1e6   :  { %v626_v3 = vpack.c.bf16 %v604_v1, %v603_v60 }
 0x1e7   :  { %v625_v4 = vpack.c.bf16 %v602_v2, %v601_v63  ;;  %v872_v5 = vpop.f32.mrb[24].mxu1 }
 0x1e8   :  { %v559_v6 = vadd.f32 %v872_v5, %v1115_v44  ;;  %v550_v9 = vpop.f32.mrb[25].mxu1 }
 0x1e9   :  { %v551_v10 = vadd.f32 %v1115_v44, %v550_v9  ;;  %v873_v11 = vpop.f32.mrb[26].mxu1 }
 0x1ea   :  { %781 = vmatpush3.bf16.xpose.msra.mxu0 %v1121_v56  ;;  %v607_v12 = vmax.f32 %v559_v6, 0.0  ;;  %v562_v58 = vadd.f32 %v873_v11, %v1115_v44  ;;  %v553_v13 = vpop.f32.mrb[27].mxu1 }
 0x1eb   :  { %782 = vmatprep.subr.bf16.mxu0 %v625_v4  ;;  %v605_v14 = vmax.f32 %v551_v10, 0.0  ;;  %v554_v15 = vadd.f32 %v1115_v44, %v553_v13 }
 0x1ec   :  { %v608_v16 = vmax.f32 %v562_v58, 0.0 }
 0x1ed   :  { %v606_v17 = vmax.f32 %v554_v15, 0.0 }
 0x1ee   :  { %v628_v18 = vpack.c.bf16 %v608_v16, %v607_v12 }
 0x1ef   :  { %v627_v19 = vpack.c.bf16 %v606_v17, %v605_v14  ;;  %v876_v20 = vpop.f32.mrb[28].mxu1 }
 0x1f0   :  { %v575_v23 = vadd.f32 %v876_v20, %v1115_v44  ;;  %v566_v24 = vpop.f32.mrb[29].mxu1 }
 0x1f1   :  { %v567_v25 = vadd.f32 %v1115_v44, %v566_v24  ;;  %v877_v26 = vpop.f32.mrb[30].mxu1 }
 0x1f2   :  { %783 = vmatpush3.bf16.xpose.msra.mxu0 %v1131_v8  ;;  %v611_v56 = vmax.f32 %v575_v23, 0.0  ;;  %v578_v27 = vadd.f32 %v877_v26, %v1115_v44  ;;  %v569_v28 = vpop.f32.mrb[31].mxu1 }
 0x1f3   :  { %784 = vmatprep.subr.bf16.mxu0 %v626_v3  ;;  %v609_v29 = vmax.f32 %v567_v25, 0.0  ;;  %v570_v30 = vadd.f32 %v1115_v44, %v569_v28  ;;  %v889_v44 = vmov 1966171168  }
 0x1f4   :  { %v612_v31 = vmax.f32 %v578_v27, 0.0  ;;  %v686_v8 = vunpack.c.l.s4 %v889_v44 }
 0x1f5   :  { %v610_v32 = vmax.f32 %v570_v30, 0.0 }
 0x1f6   :  { %v630_v33 = vpack.c.bf16 %v612_v31, %v611_v56  ;;  %v687_v38 = vunpack.c.0.s8 %v686_v8 }
 0x1f7   :  { %v629_v34 = vpack.c.bf16 %v610_v32, %v609_v29 }
 0x1fa   :  { %785 = vmatpush3.bf16.xpose.msra.mxu0 %v1129_v7  ;;  %v679_v7 = vstv %s1186_s6 }
 0x1fb   :  { %786 = vmatprep.subr.bf16.mxu0 %v627_v19 }
 0x202   :  { %787 = vmatpush3.bf16.xpose.msra.mxu0 %v1139_v22  ;;  %v689_v22 = vshrl.u32 %v688_v37, 7 }
 0x203   :  { %788 = vmatprep.subr.bf16.mxu0 %v628_v18 }
 0x204   :  { %v690_v42 = vsub.s32 %v687_v38, %v689_v22 }
 0x20a   :  { %789 = vmatpush3.bf16.xpose.msra.mxu0 %v1137_v21 }
 0x20b   :  { %790 = vmatprep.subr.bf16.mxu0 %v629_v34 }
 0x212   :  { %791 = vmatpush3.bf16.xpose.msra.mxu0 %v1147_v36 }
 0x213   :  { %792 = vmatprep.subr.bf16.mxu0 %v630_v33 }
 0x21a   :  { %793 = vmatpush3.bf16.xpose.msra.mxu0 %v1145_v35 }
 0x221   :  { %795 = vmatmul.mubr.bf16.vlgmr.msra.gmra.mrb[32].mxu0 %v1109_v43 }
 0x2f4   :  { %v671_v39 = vpop.f32.mrb[32].mxu0 }
 0x2f5   :  { %v680_v40 = vadd.f32 %v679_v7, %v671_v39  ;;  %v673_v21 = vpop.f32.mrb[33].mxu0 }
 0x2f6   :  { %v681_v41 = vadd.f32 %v679_v7, %v673_v21  ;;  %v675_v36 = vpop.f32.mrb[34].mxu0 }
 0x2f7   :  { %v676_v45 = vpop.f32.mrb[35].mxu0 }
 0x2f8   :  { %v684_v57 = vcombine.low %v680_v40, %v681_v41 }
 0x2fa   :  { %v691_v35 = vrot.slane %v684_v57, %v690_v42 }
 0x2fc   :  { %v698_v43 = vrot.slane %v691_v35, %v690_v42 }
 0x2fe   :  { %704 = vst.msk [vmem:[%s1187_s7] sm:$0x3] %vm702_vm1, %v698_v43 }

</bundles_post_ra>
